<compile_context>
chip_gen: v7x
topology: tpu7x:2x2x1
jax: 0.10.0
libtpu: 0.0.40
codegen_flags: <defaults>
</compile_context>

<pallas_src>
import functools

import jax
import jax.numpy as jnp
from jax import lax
from jax.experimental import pallas as pl
from jax.experimental.pallas import tpu as pltpu

LANE = 128  # TPU vreg lane width


def se_block_kernel(x_ref, w1_ref, b1_ref, w2_ref, b2_ref, o_ref, *,
                    inv_hw, n_full, rem, lane_acc, unroll):
    # x_ref / o_ref: (TB, C, HW) VMEM tile (TB samples per grid step).
    TB, C, _ = x_ref.shape

    # ---- Global average pool --------------------------------------------
    if n_full > 0:
        if lane_acc:
            # Lane-width accumulator: pure vld+vadd inside the loop, a single
            # cross-lane (XLU) reduce after it.
            def gap_body(i, acc):
                start = pl.multiple_of(i * LANE, LANE)
                return acc + x_ref[:, :, pl.ds(start, LANE)].astype(jnp.float32)

            acc = lax.fori_loop(0, n_full, gap_body,
                                jnp.zeros((TB, C, LANE), jnp.float32),
                                unroll=unroll)
            y = jnp.sum(acc, axis=-1)                         # (TB, C)
        else:
            # Large TB*C: keep the accumulator tiny, reduce per chunk instead.
            def gap_body(i, acc):
                start = pl.multiple_of(i * LANE, LANE)
                xc = x_ref[:, :, pl.ds(start, LANE)].astype(jnp.float32)
                return acc + jnp.sum(xc, axis=-1)

            y = lax.fori_loop(0, n_full, gap_body,
                              jnp.zeros((TB, C), jnp.float32), unroll=unroll)
    else:
        y = jnp.zeros((TB, C), jnp.float32)

    if rem > 0:  # ragged tail (HW not a multiple of 128)
        tail = x_ref[:, :, pl.ds(n_full * LANE, rem)].astype(jnp.float32)
        y = y + jnp.sum(tail, axis=-1)

    y = y * inv_hw                                            # mean, (TB, C)

    # ---- FC1 (BN1 scale folded into weights) + shift + ReLU -------------
    h = jnp.dot(y, w1_ref[...], preferred_element_type=jnp.float32) + b1_ref[...]
    h = jnp.maximum(h, 0.0)                                   # (TB, C_r)

    # ---- FC2 (BN2 scale folded into weights) + shift + Sigmoid ----------
    z = jnp.dot(h, w2_ref[...], preferred_element_type=jnp.float32) + b2_ref[...]
    # Exact sigmoid (approx reciprocal skipped to preserve <1e-5 parity with
    # the reference; negligible for a (TB, C) vector).
    z = 1.0 / (1.0 + jnp.exp(-z))                             # (TB, C)

    # Hoist the lane-splat of the gains once (JAX does not CSE broadcasts).
    bcast = LANE if n_full > 0 else rem
    zb = jnp.broadcast_to(z[:, :, None], (TB, C, bcast))      # (TB, C, 128)

    # ---- Channel-wise rescale: clean vld / vmul / vst per 128-lane chunk.
    def scale_body(i, carry):
        start = pl.multiple_of(i * LANE, LANE)
        xc = x_ref[:, :, pl.ds(start, LANE)].astype(jnp.float32)
        o_ref[:, :, pl.ds(start, LANE)] = (xc * zb).astype(o_ref.dtype)
        return carry

    if n_full > 0:
        lax.fori_loop(0, n_full, scale_body, 0, unroll=unroll)
    if rem > 0:
        xt = x_ref[:, :, pl.ds(n_full * LANE, rem)].astype(jnp.float32)
        o_ref[:, :, pl.ds(n_full * LANE, rem)] = (
            xt * zb[:, :, :rem]).astype(o_ref.dtype)


def _vmem_capacity_bytes():
    """Physical VMEM per TensorCore; conservative fallback if query fails."""
    try:
        info = pltpu.get_tpu_info()
        cap = getattr(info, "vmem_capacity_bytes", None)
        if cap:
            return int(cap)
    except Exception:
        pass
    return 64 * 1024 * 1024  # v7x-sized fallback (smallest of the listed gens)


def se_block(x, w1, bn1, w2, bn2, eps=1e-5):
    """x: (B, C, H, W); w1: (C_r, C); w2: (C, C_r); bn*: dicts gamma/beta/mean/var."""
    B, C, H, W = x.shape
    C_r = w1.shape[0]
    HW = H * W

    # Fold eval-mode BatchNorm into per-feature scale/shift (plain-JAX glue).
    def fold(bn):
        gamma = bn["gamma"].astype(jnp.float32)
        beta = bn["beta"].astype(jnp.float32)
        mean = bn["mean"].astype(jnp.float32)
        var = bn["var"].astype(jnp.float32)
        scale = gamma / jnp.sqrt(var + eps)
        shift = beta - mean * scale
        return scale, shift

    s1, b1 = fold(bn1)                                  # (C_r,)
    s2, b2 = fold(bn2)                                  # (C,)

    # Fold the BN scales into the weight columns; pass only the shifts.
    w1_f = w1.astype(jnp.float32).T * s1[None, :]       # (C, C_r)
    w2_f = w2.astype(jnp.float32).T * s2[None, :]       # (C_r, C)
    b1 = b1.reshape(1, C_r)
    b2 = b2.reshape(1, C)

    # Flatten spatial dims; no padding (full-extent last-dim block).
    x_flat = x.reshape(B, C, HW)

    # ---- VMEM budget & per-step batch (TB) selection ---------------------
    itemsize = jnp.dtype(x.dtype).itemsize
    sample_tile = C * HW * itemsize                     # one sample, in OR out
    weight_bytes = (w1_f.size + w2_f.size + b1.size + b2.size) * 4
    headroom = 2 * 1024 * 1024

    budget = int(_vmem_capacity_bytes() * 0.75)         # ~48 MiB v7x, ~96 MiB v5e/v6e

    def needed(tb, nbuf):
        # in + out tiles, nbuf-buffered each, plus (double-buffered) weights.
        return 2 * nbuf * tb * sample_tile + 2 * weight_bytes + headroom

    tb_cap = max(1, (budget - 2 * weight_bytes - headroom) // max(1, 4 * sample_tile))
    tb_cap = int(min(32, tb_cap))
    divisors = [d for d in range(1, min(B, max(tb_cap, 1)) + 1) if B % d == 0]
    # Prefer keeping the grid length >= 2 so both v7x TensorCores get work.
    preferred = [d for d in divisors if B // d >= 2]
    TB = max(preferred) if preferred else (max(divisors) if divisors else 1)

    # Buffering: fall back to single-buffered blocks if double-buffering the
    # (possibly huge) per-step tiles would blow the VMEM budget.
    buffers = 2 if needed(TB, 2) <= budget else 1
    vmem_limit = int(min(budget, max(needed(TB, buffers), 32 * 1024 * 1024)))

    # ---- In-kernel chunking over HW --------------------------------------
    n_full = HW // LANE
    rem = HW - n_full * LANE
    lane_acc = (TB * C * LANE * 4) <= 64 * 1024         # accumulator <= 16 vregs
    unroll = True if n_full <= 32 else 8

    kernel = functools.partial(
        se_block_kernel, inv_hw=1.0 / HW, n_full=n_full, rem=rem,
        lane_acc=lane_acc, unroll=unroll)

    def _tile_spec():
        if buffers == 1:
            return pl.BlockSpec((TB, C, HW), lambda b: (b, 0, 0),
                                pipeline_mode=pl.Buffered(1))
        return pl.BlockSpec((TB, C, HW), lambda b: (b, 0, 0))

    out = pl.pallas_call(
        kernel,
        out_shape=jax.ShapeDtypeStruct((B, C, HW), x.dtype),
        grid=(B // TB,),
        in_specs=[
            _tile_spec(),                                     # x (TB samples)
            pl.BlockSpec((C, C_r), lambda b: (0, 0)),         # w1 (BN-scaled)
            pl.BlockSpec((1, C_r), lambda b: (0, 0)),         # b1
            pl.BlockSpec((C_r, C), lambda b: (0, 0)),         # w2 (BN-scaled)
            pl.BlockSpec((1, C), lambda b: (0, 0)),           # b2
        ],
        out_specs=_tile_spec(),
        compiler_params=pltpu.CompilerParams(
            dimension_semantics=("parallel",),
            vmem_limit_bytes=vmem_limit,
        ),
    )(x_flat, w1_f, b1, w2_f, b2)

    return out.reshape(B, C, H, W)


def reference_se_block(x, w1, bn1, w2, bn2, eps=1e-5):
    """Pure-JAX reference matching the PyTorch forward (eval-mode BN)."""
    y = jnp.mean(x, axis=(2, 3))                              # GAP -> (B, C)
    h = y @ w1.T
    h = (h - bn1["mean"]) / jnp.sqrt(bn1["var"] + eps) * bn1["gamma"] + bn1["beta"]
    h = jnp.maximum(h, 0.0)
    z = h @ w2.T
    z = (z - bn2["mean"]) / jnp.sqrt(bn2["var"] + eps) * bn2["gamma"] + bn2["beta"]
    z = jax.nn.sigmoid(z)
    return x * z[:, :, None, None]


if __name__ == "__main__":
    key = jax.random.PRNGKey(0)
    B, C, H, W = 2, 64, 16, 16
    reduction = 16
    C_r = C // reduction  # 4

    k = jax.random.split(key, 8)
    x = jax.random.normal(k[0], (B, C, H, W), dtype=jnp.float32)

    # Deterministic synthetic parameters (shapes per nn.Linear / nn.BatchNorm1d).
    w1 = jax.random.normal(k[1], (C_r, C), dtype=jnp.float32) * 0.1   # Linear(C -> C_r), no bias
    w2 = jax.random.normal(k[2], (C, C_r), dtype=jnp.float32) * 0.1   # Linear(C_r -> C), no bias
    bn1 = {
        "gamma": 1.0 + 0.1 * jax.random.normal(k[3], (C_r,), dtype=jnp.float32),
        "beta": 0.1 * jax.random.normal(k[4], (C_r,), dtype=jnp.float32),
        "mean": 0.05 * jax.random.normal(k[5], (C_r,), dtype=jnp.float32),
        "var": jnp.ones((C_r,), dtype=jnp.float32),
    }
    bn2 = {
        "gamma": 1.0 + 0.1 * jax.random.normal(k[6], (C,), dtype=jnp.float32),
        "beta": 0.1 * jax.random.normal(k[7], (C,), dtype=jnp.float32),
        "mean": jnp.zeros((C,), dtype=jnp.float32),
        "var": jnp.ones((C,), dtype=jnp.float32),
    }

    out = se_block(x, w1, bn1, w2, bn2)
    out = jax.block_until_ready(out)

    ref = reference_se_block(x, w1, bn1, w2, bn2)
    assert out.shape == (B, C, H, W)
    assert jnp.allclose(out, ref, atol=1e-5, rtol=1e-5), "mismatch vs JAX reference"

    print("KERNEL_OK")
</pallas_src>

<mosaic_0001>
module attributes {stable_mosaic.version = 11 : i64} {
  func.func @se_block_kernel(%arg0: i32, %arg1: memref<1x64x256xf32, #tpu.memory_space<vmem>>, %arg2: memref<64x4xf32, #tpu.memory_space<vmem>>, %arg3: memref<1x4xf32, #tpu.memory_space<vmem>>, %arg4: memref<4x64xf32, #tpu.memory_space<vmem>>, %arg5: memref<1x64xf32, #tpu.memory_space<vmem>>, %arg6: memref<1x64x256xf32, #tpu.memory_space<vmem>>) attributes {dimension_semantics = [#tpu.dimension_semantics<parallel>], iteration_bounds = array<i64: 2>, scalar_prefetch = 0 : i64, scratch_operands = 0 : i64, tpu.core_type = #tpu.core_type<tc>, window_params = [{transform_indices = @transform_0, window_bounds = array<i64: 1, 64, 256>}, {pipeline_mode = #tpu.pipeline_mode<synchronous>, transform_indices = @transform_1, window_bounds = array<i64: 64, 4>}, {pipeline_mode = #tpu.pipeline_mode<synchronous>, transform_indices = @transform_2, window_bounds = array<i64: 1, 4>}, {pipeline_mode = #tpu.pipeline_mode<synchronous>, transform_indices = @transform_3, window_bounds = array<i64: 4, 64>}, {pipeline_mode = #tpu.pipeline_mode<synchronous>, transform_indices = @transform_4, window_bounds = array<i64: 1, 64>}, {transform_indices = @transform_5, window_bounds = array<i64: 1, 64, 256>}]} {
    %cst = arith.constant 0.000000e+00 : f32
    %0 = vector.broadcast %cst : f32 to vector<1x64x128xf32>
    %c0_i32 = arith.constant 0 : i32
    %c128_i32 = arith.constant 128 : i32
    %1 = arith.muli %c0_i32, %c128_i32 : i32
    %2 = tpu.assume_multiple %1, 128 : i32
    %c0 = arith.constant 0 : index
    %c0_0 = arith.constant 0 : index
    %3 = arith.index_cast %2 : i32 to index
    %4 = vector.load %arg1[%c0, %c0_0, %3] : memref<1x64x256xf32, #tpu.memory_space<vmem>>, vector<1x64x128xf32>
    %5 = arith.addf %0, %4 : vector<1x64x128xf32>
    %c1_i32 = arith.constant 1 : i32
    %c128_i32_1 = arith.constant 128 : i32
    %6 = arith.muli %c1_i32, %c128_i32_1 : i32
    %7 = tpu.assume_multiple %6, 128 : i32
    %c0_2 = arith.constant 0 : index
    %c0_3 = arith.constant 0 : index
    %8 = arith.index_cast %7 : i32 to index
    %9 = vector.load %arg1[%c0_2, %c0_3, %8] : memref<1x64x256xf32, #tpu.memory_space<vmem>>, vector<1x64x128xf32>
    %10 = arith.addf %5, %9 : vector<1x64x128xf32>
    %c2_i32 = arith.constant 2 : i32
    %cst_4 = arith.constant dense<0.000000e+00> : vector<1x64xf32>
    %11 = vector.multi_reduction <add>, %10, %cst_4 [2] : vector<1x64x128xf32> to vector<1x64xf32>
    %cst_5 = arith.constant 3.906250e-03 : f32
    %12 = vector.broadcast %cst_5 : f32 to vector<1x64xf32>
    %13 = arith.mulf %11, %12 : vector<1x64xf32>
    %c0_6 = arith.constant 0 : index
    %c0_7 = arith.constant 0 : index
    %14 = vector.load %arg2[%c0_6, %c0_7] : memref<64x4xf32, #tpu.memory_space<vmem>>, vector<64x4xf32>
    %cst_8 = arith.constant dense<0.000000e+00> : vector<1x4xf32>
    %15 = tpu.matmul %13, %14, %cst_8 {dimension_numbers = #tpu.dot_dimension_numbers<[1], [0], [0], [1], [0, 0, 1, 1], [], []>} : vector<1x64xf32>, vector<64x4xf32>, vector<1x4xf32> -> vector<1x4xf32>
    %c0_9 = arith.constant 0 : index
    %c0_10 = arith.constant 0 : index
    %16 = vector.load %arg3[%c0_9, %c0_10] : memref<1x4xf32, #tpu.memory_space<vmem>>, vector<1x4xf32>
    %17 = arith.addf %15, %16 : vector<1x4xf32>
    %cst_11 = arith.constant 0.000000e+00 : f32
    %18 = vector.broadcast %cst_11 : f32 to vector<1x4xf32>
    %19 = arith.maximumf %17, %18 : vector<1x4xf32>
    %c0_12 = arith.constant 0 : index
    %c0_13 = arith.constant 0 : index
    %20 = vector.load %arg4[%c0_12, %c0_13] : memref<4x64xf32, #tpu.memory_space<vmem>>, vector<4x64xf32>
    %cst_14 = arith.constant dense<0.000000e+00> : vector<1x64xf32>
    %21 = tpu.matmul %19, %20, %cst_14 {dimension_numbers = #tpu.dot_dimension_numbers<[1], [0], [0], [1], [0, 0, 1, 1], [], []>} : vector<1x4xf32>, vector<4x64xf32>, vector<1x64xf32> -> vector<1x64xf32>
    %c0_15 = arith.constant 0 : index
    %c0_16 = arith.constant 0 : index
    %22 = vector.load %arg5[%c0_15, %c0_16] : memref<1x64xf32, #tpu.memory_space<vmem>>, vector<1x64xf32>
    %23 = arith.addf %21, %22 : vector<1x64xf32>
    %cst_17 = arith.constant 0.000000e+00 : f32
    %24 = vector.broadcast %cst_17 : f32 to vector<1x64xf32>
    %25 = arith.subf %24, %23 : vector<1x64xf32>
    %26 = math.exp %25 : vector<1x64xf32>
    %cst_18 = arith.constant 1.000000e+00 : f32
    %27 = vector.broadcast %cst_18 : f32 to vector<1x64xf32>
    %28 = arith.addf %27, %26 : vector<1x64xf32>
    %cst_19 = arith.constant 1.000000e+00 : f32
    %29 = vector.broadcast %cst_19 : f32 to vector<1x64xf32>
    %30 = arith.divf %29, %28 : vector<1x64xf32>
    %31 = vector.shape_cast %30 : vector<1x64xf32> to vector<1x64x1xf32>
    %32 = vector.shape_cast %31 : vector<1x64x1xf32> to vector<1x64x1xf32>
    %33 = vector.broadcast %32 : vector<1x64x1xf32> to vector<1x64x128xf32>
    %c0_i32_20 = arith.constant 0 : i32
    %c128_i32_21 = arith.constant 128 : i32
    %34 = arith.muli %c0_i32_20, %c128_i32_21 : i32
    %35 = tpu.assume_multiple %34, 128 : i32
    %c0_22 = arith.constant 0 : index
    %c0_23 = arith.constant 0 : index
    %36 = arith.index_cast %35 : i32 to index
    %37 = vector.load %arg1[%c0_22, %c0_23, %36] : memref<1x64x256xf32, #tpu.memory_space<vmem>>, vector<1x64x128xf32>
    %38 = arith.mulf %37, %33 : vector<1x64x128xf32>
    %c0_24 = arith.constant 0 : index
    %c0_25 = arith.constant 0 : index
    %39 = arith.index_cast %35 : i32 to index
    %40 = vector.load %arg6[%c0_24, %c0_25, %39] : memref<1x64x256xf32, #tpu.memory_space<vmem>>, vector<1x64x128xf32>
    tpu.vector_store %arg6[%c0_24, %c0_25, %39], %38 {strides = array<i32>} : memref<1x64x256xf32, #tpu.memory_space<vmem>>, vector<1x64x128xf32>,
    %c1_i32_26 = arith.constant 1 : i32
    %c128_i32_27 = arith.constant 128 : i32
    %41 = arith.muli %c1_i32_26, %c128_i32_27 : i32
    %42 = tpu.assume_multiple %41, 128 : i32
    %c0_28 = arith.constant 0 : index
    %c0_29 = arith.constant 0 : index
    %43 = arith.index_cast %42 : i32 to index
    %44 = vector.load %arg1[%c0_28, %c0_29, %43] : memref<1x64x256xf32, #tpu.memory_space<vmem>>, vector<1x64x128xf32>
    %45 = arith.mulf %44, %33 : vector<1x64x128xf32>
    %c0_30 = arith.constant 0 : index
    %c0_31 = arith.constant 0 : index
    %46 = arith.index_cast %42 : i32 to index
    %47 = vector.load %arg6[%c0_30, %c0_31, %46] : memref<1x64x256xf32, #tpu.memory_space<vmem>>, vector<1x64x128xf32>
    tpu.vector_store %arg6[%c0_30, %c0_31, %46], %45 {strides = array<i32>} : memref<1x64x256xf32, #tpu.memory_space<vmem>>, vector<1x64x128xf32>,
    %c2_i32_32 = arith.constant 2 : i32
    return
  }
  func.func @transform_0(%arg0: i32) -> (i32, i32, i32) {
    %c0_i32 = arith.constant 0 : i32
    %c0_i32_0 = arith.constant 0 : i32
    %c0_i32_1 = arith.constant 0 : i32
    return %arg0, %c0_i32, %c0_i32_0 : i32, i32, i32
  }
  func.func @transform_1(%arg0: i32) -> (i32, i32) {
    %c0_i32 = arith.constant 0 : i32
    %c0_i32_0 = arith.constant 0 : i32
    %c0_i32_1 = arith.constant 0 : i32
    return %c0_i32, %c0_i32_0 : i32, i32
  }
  func.func @transform_2(%arg0: i32) -> (i32, i32) {
    %c0_i32 = arith.constant 0 : i32
    %c0_i32_0 = arith.constant 0 : i32
    %c0_i32_1 = arith.constant 0 : i32
    return %c0_i32, %c0_i32_0 : i32, i32
  }
  func.func @transform_3(%arg0: i32) -> (i32, i32) {
    %c0_i32 = arith.constant 0 : i32
    %c0_i32_0 = arith.constant 0 : i32
    %c0_i32_1 = arith.constant 0 : i32
    return %c0_i32, %c0_i32_0 : i32, i32
  }
  func.func @transform_4(%arg0: i32) -> (i32, i32) {
    %c0_i32 = arith.constant 0 : i32
    %c0_i32_0 = arith.constant 0 : i32
    %c0_i32_1 = arith.constant 0 : i32
    return %c0_i32, %c0_i32_0 : i32, i32
  }
  func.func @transform_5(%arg0: i32) -> (i32, i32, i32) {
    %c0_i32 = arith.constant 0 : i32
    %c0_i32_0 = arith.constant 0 : i32
    %c0_i32_1 = arith.constant 0 : i32
    return %arg0, %c0_i32, %c0_i32_0 : i32, i32, i32
  }
}

</mosaic_0001>

<bundles_post_ra>
// kernel: tpu_custom_call.1
= control target key start
LH: loop header
LB: loop body
LE: loop exit
PB: predicated region body
PF: predicated region fallthrough
CT: control target
= control target key end

     0   :  { %10 = vsyncpa [#allocation3], 0  ;;  %s1273_s0 = inlined_call_operand.hbm [shape: f32[2,64,256], index: 0, kind: input, shape index: {}]   ;;  %s1274_s1 = inlined_call_operand.vmem [shape: f32[64,4], index: 1, kind: input, shape index: {}]   ;;  %s1275_s2 = inlined_call_operand.vmem [shape: f32[1,4], index: 2, kind: input, shape index: {}]   ;;  %s1276_s3 = inlined_call_operand.vmem [shape: f32[4,64], index: 3, kind: input, shape index: {}]   ;;  %s1277_s4 = inlined_call_operand.vmem [shape: f32[1,64], index: 4, kind: input, shape index: {}]   ;;  %s1278_s5 = inlined_call_operand.hbm [shape: f32[2,64,256], index: 5, kind: output, shape index: {}]  }
   0x1   :  { %12 = vsyncpa [#allocation3 + $0x1], 0 }
   0x2   :  { %13 = vsyncpa [#allocation4], 0 }
   0x3   :  { %15 = vsyncpa [#allocation4 + $0x1], 0  ;;  %s979_s18 = smov 0   ;;  %s981_s19 = smov 0  }
   0x4   :  { %s983_s20 = smov 0   ;;  %s985_s21 = smov 0  }
   0x5 LB: > { %s1000_s22 = sadd.s32 4294967295, %s938_s21   ;;  %s695_s23 = sadd.s32 4294967294, %s938_s21   ;;  %s938_s21 = sphi %s985_s21, %s1291_s21   ;;  %s934_s20 = sphi %s983_s20, %s1290_s20   ;;  %s930_s19 = sphi %s981_s19, %s1289_s19   ;;  %s926_s18 = sphi %s979_s18, %s1288_s18  }
   0x6   : > { %s1004_s24 = sadd.s32 1, %s938_s21   ;;  %s28_s25 = sadd.s32 1, %s934_s20 }
   0x7   : > { %s25_s26 = ssub.s32 %s938_s21, %s1004_s24  ;;  %p35_p0 = scmp.ne.s32.totalorder %s934_s20, %s930_s19 }
   0x8   : > { %p26_p1 = scmp.eq.s32.totalorder %s25_s26, 0  ;;  %p36_p2 = scmp.eq.s32.totalorder %s938_s21, 0 }
   0x9   : > { %p41_p3 = scmp.ne.s32.totalorder %s930_s19, %s926_s18  ;;  %p42_p4 = scmp.eq.s32.totalorder %s1000_s22, 0 }
   0xa   : > { %s1016_s27 = scalar_select %p26_p1, %s934_s20, %s28_s25  }
   0xb   : > { %p1018_p5 = por %p36_p2, %p35_p0  ;;  %p1022_p6 = por %p42_p4, %p41_p3 }
   0xc   : > { %p149_p7 = scmp.eq.s32.totalorder %s1000_s22, 1  ;;  %p155_p8 = scmp.eq.s32.totalorder %s695_s23, 1 }
   0xd   : > { %p797_p10 = scmp.lt.s32.totalorder %s938_s21, 2  ;;  %s187_s7 = sand.u32 1, %s934_s20  }
   0xe   : > { %p1029_p11 = por %p149_p7, %p35_p0  ;;  %p1033_p12 = por %p155_p8, %p41_p3 }
   0xf   : > { %s736_s8 = sshll.u32 %s938_s21, 11  ;;  %s698_s9 = sshll.u32 %s187_s7, 7 }
  0x10   : > { %s1282_s30 = scalar_select %p1029_p11, 1, 0 }
  0x11   : > { %s1283_s6 = scalar_select %p1033_p12, 1, 0 }
  0x12   : > { %s1042_s12 = scalar_lea.hbm %s1273_s0, %s736_s8  ;;  %s191_s13 = scalar_lea.vmem [#allocation2], %s698_s9 }
  0x13   : > { %s198_s14 = sshll.u32 %s191_s13, 4  ;;  %p1046_p13 = pnand %p797_p10, %p1018_p5  ;;  %s1050_s14 = int_to_ptr.vmem [resolvable:$true] %s198_s14 }
  0x14   : > { %s1052_s16 = scalar_lea.sflag [#allocation3], %s187_s7  ;;  %s842_s17 = scalar_lea.hbm %s1042_s12, 2048 }
  0x15   : > { %p843_p0 = scmp.ne.s32.totalorder %s1042_s12, %s842_s17  ;;  %p844_p1 = pneg %p1046_p13 }
  0x16   : > { %s847_s26 = scalar_lea.hbm %s1273_s0, 4096  ;;  %p848_p4 = scmp.lt.u32.totalorder %s1042_s12, %s1273_s0 }
  0x17   : > { %p845_p2 = pnand %p844_p1, %p843_p0  ;;  %p849_p5 = scmp.lt.u32.totalorder %s847_s26, %s842_s17 }
  0x18   : > { %p851_p8 = scmp.lt.u32.totalorder %s842_s17, %s1042_s12 }
  0x19   : > { %p846_p3 = pneg %p845_p2  ;;  %p850_p7 = por %p849_p5, %p848_p4 }
  0x1b   : > { %p852_p10 = por %p851_p8, %p850_p7 }
  0x1d   : > { %p853_p9 = pnand %p852_p10, %p846_p3 }
  0x1f   : > { %856 = shalt.err (!%p853_p9)
}
  0x20   : > { %s857_s7 = scalar_lea.vmem %s1050_s14, 2048  ;;  %s940_s9 = smov [#allocation2]  }
  0x21   : > { %p858_p0 = scmp.ne.s32.totalorder %s1050_s14, %s857_s7  ;;  %s862_s10 = sshll.u32 %s940_s9, 4  ;;  %s863_s10 = int_to_ptr.vmem [resolvable:$false] %s862_s10 }
  0x22   : > { %s864_s11 = scalar_lea.vmem %s863_s10, 4096  ;;  %p865_p11 = scmp.lt.s32.totalorder %s1050_s14, %s863_s10 }
  0x23   : > { %p860_p2 = pnand %p858_p0, %p844_p1  ;;  %p866_p4 = scmp.lt.s32.totalorder %s864_s11, %s857_s7 }
  0x25   : > { %p861_p12 = pneg %p860_p2  ;;  %p867_p5 = por %p866_p4, %p865_p11 }
  0x27   : > { %p868_p7 = pnand %p867_p5, %p861_p12 }
  0x29   : > { %871 = shalt.err (!%p868_p7)
}
  0x2a   : > { %s941_s13 = smov 256   ;;  %s942_s17 = smov 16  }
  0x2b   : > { %792 = dma.hbm_to_vmem [thread:$0]  (!%p1046_p13), %s1042_s12, 2048, %s1050_s14, %s1052_s16, %s941_s13, %s941_s13, %s942_s17  }
  0x2c   : > { %p701_p9 = scmp.ge.s32.totalorder %s938_s21, 1  ;;  %p206_p1 = scmp.lt.s32.totalorder %s938_s21, 3 }
  0x2e   : > { %p207_p3 = pnand %p701_p9, %p206_p1 }
  0x2f   : > { %s1083_s23 = sand.u32 (!%p207_p3), 1, %s930_s19  }
  0x30   : > { %210 = sbr.rel (%p207_p3) target bundleno = 827 (0x33b), region = 40  ;;  %s702_s25 = sshll.u32 (!%p207_p3), %s1083_s23, 7 }
  0x31   : > { %s213_s26 = scalar_lea.sflag (!%p207_p3), [#allocation3], %s1083_s23  ;;  %s216_s28 = scalar_lea.vmem (!%p207_p3), [#allocation2], %s702_s25 }
  0x37   : > { %917 = dma.done.wait (%p1022_p6), %s213_s26, 2048  }
  0x38   : > { %919 = vsyncadd (%p1022_p6), %s213_s26, 4294965248  ;;  %v1093_v0 = vld [vmem:[%s216_s28] sm:$0xff]  ;;  %v1095_v1 = vld [vmem:[%s216_s28 + $0x8] sm:$0xff]  ;;  %v943_v27 = vmov 0.0|0.0   ;;  %vm944_vm0 = vmmov 0   ;;  %v945_v37 = vmov 0.0   ;;  %v317_v38 = vlaneseq }
  0x39   : > { %v1097_v2 = vld [vmem:[%s216_s28 + $0x20] sm:$0xff]  ;;  %v268_v3 = vadd.f32 %v1095_v1, %v1093_v0  ;;  %v1101_v4 = vld [vmem:[%s216_s28 + $0x28] sm:$0xff]  ;;  %v1103_v5 = vld [vmem:[%s216_s28 + $0x10] sm:$0xff]  ;;  %773 = vmatprep.subr.bf16.mxu0 %v943_v27  ;;  %765 = vmatprep.mubr.msk.f32.mxu0 %vm944_vm0, %v945_v37  ;;  %vm328_vm1 = vcmask 130112   ;;  %vm335_vm2 = vcmask 195712   ;;  %vm342_vm3 = vcmask 261312  }
  0x3a   : > { %v1105_v6 = vld [vmem:[%s216_s28 + $0x18] sm:$0xff]  ;;  %v270_v7 = vadd.f32 %v1101_v4, %v1097_v2  ;;  %v1109_v8 = vld [vmem:[%s216_s28 + $0x30] sm:$0xff]  ;;  %v1117_v12 = vld [vmem:[%s216_s28 + $0x40] sm:$0xff]  ;;  %768 = vmatprep.subr.mxu1 %v945_v37  ;;  %770 = vmatprep.mubr.msk.f32.mxu1 %vm944_vm0, %v945_v37  ;;  %v318_v39 = vand.u32 127, %v317_v38  ;;  %v1165_v40 = vshrl.u32 %v317_v38, 7  ;;  %vm349_vm4 = vcmask 326912  }
  0x3b   : > { %v1111_v9 = vld [vmem:[%s216_s28 + $0x38] sm:$0xff]  ;;  %276 = vadd.xlane.f32.xlu0 %v268_v3  ;;  %v269_v10 = vadd.f32 %v1105_v6, %v1103_v5  ;;  %v1119_v13 = vld [vmem:[%s216_s28 + $0x48] sm:$0xff]  ;;  %v1121_v14 = vld [vmem:[%s216_s28 + $0x50] sm:$0xff]  ;;  %vm356_vm5 = vcmask 392512   ;;  %vm363_vm6 = vcmask 458112   ;;  %vm370_vm7 = vcmask 523712  }
  0x3c   : > { %280 = vadd.xlane.f32.xlu1 %v270_v7  ;;  %v271_v11 = vadd.f32 %v1111_v9, %v1109_v8  ;;  %v1123_v15 = vld [vmem:[%s216_s28 + $0x58] sm:$0xff]  ;;  %v272_v16 = vadd.f32 %v1119_v13, %v1117_v12  ;;  %v1129_v18 = vld [vmem:[%s216_s28 + $0x60] sm:$0xff]  ;;  %v1131_v19 = vld [vmem:[%s216_s28 + $0x68] sm:$0xff]  ;;  %v323_v41 = vadd.s32 4294967288, %v318_v39  ;;  %v330_v43 = vadd.s32 4294967280, %v318_v39  ;;  %s1192_s10 = scalar_lea.vmem [#allocation5], %s702_s25 }
  0x3d   : > { %v273_v17 = vadd.f32 %v1123_v15, %v1121_v14  ;;  %v1133_v20 = vld [vmem:[%s216_s28 + $0x70] sm:$0xff]  ;;  %v1135_v21 = vld [vmem:[%s216_s28 + $0x78] sm:$0xff]  ;;  %v274_v22 = vadd.f32 %v1131_v19, %v1129_v18  ;;  %v300_v24 = vld [vmem:[%s1274_s1] sm:$0xff]  ;;  %v337_v44 = vadd.s32 4294967272, %v318_v39  ;;  %v321_v46 = vsub.s32 %v318_v39, %v1165_v40  ;;  %s737_s25 = sshll.u32 %s1000_s22, 11  ;;  %s622_s11 = sshll.u32 %s1192_s10, 4  ;;  %s1225_s11 = int_to_ptr.vmem [resolvable:$true] %s622_s11 }
  0x3e   : > { %v275_v23 = vadd.f32 %v1135_v21, %v1133_v20  ;;  %v301_v25 = vld [vmem:[%s1274_s1 + $0x8] sm:$0xff]  ;;  %v302_v28 = vld [vmem:[%s1274_s1 + $0x10] sm:$0xff]  ;;  %v303_v29 = vld [vmem:[%s1274_s1 + $0x18] sm:$0xff]  ;;  %v326_v48 = vsub.s32 %v323_v41, %v1165_v40  ;;  %v344_v49 = vadd.s32 4294967264, %v318_v39  ;;  %v333_v50 = vsub.s32 %v330_v43, %v1165_v40  ;;  %s1223_s26 = scalar_lea.hbm %s1278_s5, %s737_s25  ;;  %s609_s22 = scalar_lea.sflag [#allocation4], %s1083_s23 }
  0x3f   : > { %278 = vadd.xlane.f32.xlu0 %v269_v10  ;;  %v774_v26 = vpack.c.bf16 %v301_v25, %v300_v24  ;;  %v777_v30 = vpack.c.bf16 %v303_v29, %v302_v28  ;;  %v304_v31 = vld [vmem:[%s1274_s1 + $0x20] sm:$0xff]  ;;  %v305_v32 = vld [vmem:[%s1274_s1 + $0x28] sm:$0xff]  ;;  %v306_v34 = vld [vmem:[%s1274_s1 + $0x30] sm:$0xff]  ;;  %v340_v53 = vsub.s32 %v337_v44, %v1165_v40  ;;  %v351_v54 = vadd.s32 4294967256, %v318_v39  ;;  %s872_s28 = scalar_lea.vmem %s1225_s11, 2048  ;;  %p1285_p11 = scmp.ne.s32.totalorder %s1282_s30, 0 }
  0x40   : > { %282 = vadd.xlane.f32.xlu1 %v271_v11  ;;  %v780_v33 = vpack.c.bf16 %v305_v32, %v304_v31  ;;  %v307_v35 = vld [vmem:[%s1274_s1 + $0x38] sm:$0xff]  ;;  %v347_v60 = vsub.s32 %v344_v49, %v1165_v40  ;;  %v358_v61 = vadd.s32 4294967248, %v318_v39  ;;  %v365_v10 = vadd.s32 4294967240, %v318_v39  ;;  %v446_v39 = vld [vmem:[%s1276_s3] sm:$0xf]  ;;  %p873_p6 = scmp.ne.s32.totalorder %s1225_s11, %s872_s28  ;;  %s946_s29 = smov [#allocation5]  }
  0x41   : > { %775 = vmatpush3.bf16.msra.mxu0 %v774_v26  ;;  %v783_v36 = vpack.c.bf16 %v307_v35, %v306_v34  ;;  %v354_v7 = vsub.s32 %v351_v54, %v1165_v40  ;;  %vm372_vm8 = vcmask 523264   ;;  %vm452_vm9 = vcmask 1043456   ;;  %v308_v41 = vld [vmem:[%s1275_s2] sm:$0x1]  ;;  %s876_s12 = sshll.u32 %s946_s29, 4  ;;  %s877_s12 = int_to_ptr.vmem [resolvable:$false] %s876_s12 }
  0x42   : > { %776 = vmatprep.subr.bf16.mxu0 %v943_v27  ;;  %v361_v26 = vsub.s32 %v358_v61, %v1165_v40  ;;  %v368_v29 = vsub.s32 %v365_v10, %v1165_v40  ;;  %769 = vmatpush3.msk.msra.mxu1 %vm452_vm9, %v446_v39  ;;  %vm448_vm10 = vcmask 31744   ;;  %v534_v54 = vsub.s32 0, %v1165_v40  ;;  %p874_p12 = pnand %p873_p6, %p1285_p11  ;;  %s878_s14 = scalar_lea.vmem %s877_s12, 4096 }
  0x43   : > { %284 = vadd.xlane.f32.xlu0 %v272_v16  ;;  %p879_p8 = scmp.lt.s32.totalorder %s1225_s11, %s877_s12  ;;  %p880_p10 = scmp.lt.s32.totalorder %s878_s14, %s872_s28 }
  0x44   : > { %286 = vadd.xlane.f32.xlu1 %v273_v17  ;;  %p875_p13 = pneg %p874_p12 }
  0x45   : > { %778 = vmatpush3.bf16.msra.mxu0 %v777_v30  ;;  %p881_p0 = por %p880_p10, %p879_p8 }
  0x46   : > { %779 = vmatprep.subr.bf16.mxu0 %v943_v27 }
  0x47   : > { %288 = vadd.xlane.f32.xlu0 %v274_v22  ;;  %p882_p2 = pnand %p881_p0, %p875_p13 }
  0x48   : > { %290 = vadd.xlane.f32.xlu1 %v275_v23 }
  0x49   : > { %781 = vmatpush3.bf16.msra.mxu0 %v780_v33 }
  0x4a   : > { %782 = vmatprep.subr.bf16.mxu0 %v943_v27 }
  0x4d   : > { %784 = vmatpush3.bf16.msra.mxu0 %v783_v36 }
  0xc8   : > { %v277_v42 = vpop.xlane.xlu0 %276 }
  0xc9   : > { %v281_v45 = vpop.xlane.xlu1 %280  ;;  %v292_v47 = vmul.f32 0.00390625, %v277_v42 }
  0xca   : > { %v294_v51 = vmul.f32 0.00390625, %v281_v45 }
  0xcb   : > { %v322_v58 = vrot.slane %v292_v47, %v321_v46  ;;  %v447_v46 = vld [vmem:[%s1277_s4] sm:$0x1] }
  0xcc   : > { %v279_v52 = vpop.xlane.xlu0 %278  ;;  %v334_v62 = vrot.slane %v294_v51, %v333_v50 }
  0xcd   : > { %v293_v55 = vmul.f32 0.00390625, %v279_v52  ;;  %v283_v56 = vpop.xlane.xlu1 %282 }
  0xce   : > { %v295_v57 = vmul.f32 0.00390625, %v283_v56 }
  0xcf   : > { %v327_v59 = vrot.slane %v293_v55, %v326_v48 }
  0xd0   : > { %v341_v63 = vrot.slane %v295_v57, %v340_v53  ;;  %v285_v3 = vpop.xlane.xlu0 %284 }
  0xd1   : > { %v329_v11 = vsel %vm328_vm1, %v327_v59, %v322_v58  ;;  %v296_v16 = vmul.f32 0.00390625, %v285_v3  ;;  %v287_v17 = vpop.xlane.xlu1 %286 }
  0xd2   : > { %v336_v22 = vsel %vm335_vm2, %v334_v62, %v329_v11  ;;  %v297_v23 = vmul.f32 0.00390625, %v287_v17 }
  0xd3   : > { %v343_v24 = vsel %vm342_vm3, %v341_v63, %v336_v22  ;;  %v348_v25 = vrot.slane %v296_v16, %v347_v60 }
  0xd4   : > { %v355_v27 = vrot.slane %v297_v23, %v354_v7  ;;  %v289_v28 = vpop.xlane.xlu0 %288 }
  0xd5   : > { %v350_v30 = vsel %vm349_vm4, %v348_v25, %v343_v24  ;;  %v298_v31 = vmul.f32 0.00390625, %v289_v28  ;;  %v291_v32 = vpop.xlane.xlu1 %290 }
  0xd6   : > { %v299_v33 = vmul.f32 0.00390625, %v291_v32  ;;  %v357_v35 = vsel %vm356_vm5, %v355_v27, %v350_v30 }
  0xd7   : > { %v362_v34 = vrot.slane %v298_v31, %v361_v26 }
  0xd8   : > { %v369_v36 = vrot.slane %v299_v33, %v368_v29 }
  0xd9   : > { %v364_v37 = vsel %vm363_vm6, %v362_v34, %v357_v35 }
  0xda   : > { %v371_v38 = vsel %vm370_vm7, %v369_v36, %v364_v37 }
  0xdb   : > { %766 = vmatmul.mubr.msk.f32.vlgmr.msra.gmra.mrb[0].mxu0 %vm372_vm8, %v371_v38 }
 0x1ae   : > { %v441_v42 = vpop.f32.mrb[0].mxu0 }
 0x1af   : > { %v442_v43 = vadd.f32 %v441_v42, %v308_v41  ;;  %v767_v44 = vpop.f32.mrb[1].mxu0 }
 0x1b1   : > { %v445_v45 = vmax.f32 %v442_v43, 0.0 }
 0x1b3   : > { %771 = vmatmul.mubr.msk.f32.vlgmr.msra.gmra.mrb[0].mxu1 %vm448_vm10, %v445_v45 }
 0x286   : > { %v522_v47 = vpop.f32.mrb[0].mxu1 }
 0x287   : > { %v523_v48 = vadd.f32 %v522_v47, %v447_v46  ;;  %v772_v49 = vpop.f32.mrb[1].mxu1 }
 0x289   : > { %v526_v50 = vsub.f32 0.0, %v523_v48 }
 0x28b   : > { %v527_v51 = vmul.f32 1.442695, %v526_v50 }
 0x28d   : > { %838 = vpow2.f32 %v527_v51 }
 0x297   : > { %v839_v52 = vpop.eup %838 }
 0x298   : > { %v529_v53 = vadd.f32 1.0, %v839_v52 }
 0x29a   : > { %840 = vrcp.f32 %v529_v53 }
 0x2a4   : > { %v841_v55 = vpop.eup %840 }
 0x2a5   : > { %v535_v56 = vrot.slane %v841_v55, %v534_v54 }
 0x2a7   : > { %541 = vbcast.lane.b32.xlu1 %v535_v56, 264  ;;  %537 = vbcast.lane.b32.xlu0 %v535_v56, 256 }
 0x2ab   : > { %545 = vbcast.lane.b32.xlu1 %v535_v56, 272  ;;  %553 = vbcast.lane.b32.xlu0 %v535_v56, 288 }
 0x2af   : > { %549 = vbcast.lane.b32.xlu1 %v535_v56, 280  ;;  %561 = vbcast.lane.b32.xlu0 %v535_v56, 304 }
 0x2b3   : > { %557 = vbcast.lane.b32.xlu1 %v535_v56, 296 }
 0x2b7   : > { %565 = vbcast.lane.b32.xlu1 %v535_v56, 312 }
 0x319   : > { %v542_v57 = vpop.permute.xlu1 %541  ;;  %v538_v58 = vpop.permute.xlu0 %537 }
 0x31a   : > { %v568_v59 = vmul.f32 %v542_v57, %v1103_v5  ;;  %v592_v60 = vmul.f32 %v1105_v6, %v542_v57  ;;  %v567_v61 = vmul.f32 %v538_v58, %v1093_v0  ;;  %v591_v40 = vmul.f32 %v1095_v1, %v538_v58 }
 0x31c   : > { %576 = vst [vmem:[%s1192_s10 + $0x10] sm:$0xff] %v568_v59  ;;  %724 = vst [vmem:[%s1192_s10 + $0x18] sm:$0xff] %v592_v60 }
 0x31d   : > { %575 = vst [vmem:[%s1192_s10] sm:$0xff] %v567_v61  ;;  %723 = vst [vmem:[%s1192_s10 + $0x8] sm:$0xff] %v591_v40  ;;  %v546_v5 = vpop.permute.xlu1 %545  ;;  %v554_v0 = vpop.permute.xlu0 %553 }
 0x31e   : > { %v569_v1 = vmul.f32 %v546_v5, %v1097_v2  ;;  %v593_v6 = vmul.f32 %v1101_v4, %v546_v5  ;;  %v571_v62 = vmul.f32 %v554_v0, %v1117_v12  ;;  %v595_v63 = vmul.f32 %v1119_v13, %v554_v0 }
 0x320   : > { %577 = vst [vmem:[%s1192_s10 + $0x20] sm:$0xff] %v569_v1  ;;  %725 = vst [vmem:[%s1192_s10 + $0x28] sm:$0xff] %v593_v6 }
 0x321   : > { %579 = vst [vmem:[%s1192_s10 + $0x40] sm:$0xff] %v571_v62  ;;  %727 = vst [vmem:[%s1192_s10 + $0x48] sm:$0xff] %v595_v63  ;;  %v550_v3 = vpop.permute.xlu1 %549  ;;  %v562_v7 = vpop.permute.xlu0 %561 }
 0x322   : > { %v570_v2 = vmul.f32 %v550_v3, %v1109_v8  ;;  %v594_v10 = vmul.f32 %v1111_v9, %v550_v3  ;;  %v573_v4 = vmul.f32 %v562_v7, %v1129_v18  ;;  %v597_v12 = vmul.f32 %v1131_v19, %v562_v7 }
 0x324   : > { %578 = vst [vmem:[%s1192_s10 + $0x30] sm:$0xff] %v570_v2  ;;  %726 = vst [vmem:[%s1192_s10 + $0x38] sm:$0xff] %v594_v10 }
 0x325   : > { %581 = vst [vmem:[%s1192_s10 + $0x60] sm:$0xff] %v573_v4  ;;  %729 = vst [vmem:[%s1192_s10 + $0x68] sm:$0xff] %v597_v12  ;;  %v558_v13 = vpop.permute.xlu1 %557 }
 0x326   : > { %v572_v11 = vmul.f32 %v558_v13, %v1121_v14  ;;  %v596_v16 = vmul.f32 %v1123_v15, %v558_v13 }
 0x328   : > { %580 = vst [vmem:[%s1192_s10 + $0x50] sm:$0xff] %v572_v11  ;;  %728 = vst [vmem:[%s1192_s10 + $0x58] sm:$0xff] %v596_v16 }
 0x329   : > { %v566_v8 = vpop.permute.xlu1 %565 }
 0x32a   : > { %v574_v9 = vmul.f32 %v566_v8, %v1133_v20  ;;  %v598_v14 = vmul.f32 %v1135_v21, %v566_v8 }
 0x32c   : > { %582 = vst [vmem:[%s1192_s10 + $0x70] sm:$0xff] %v574_v9  ;;  %730 = vst [vmem:[%s1192_s10 + $0x78] sm:$0xff] %v598_v14 }
 0x32d   : > { %885 = shalt.err (!%p882_p2)
}
 0x32e   : > { %s886_s15 = scalar_lea.hbm %s1223_s26, 2048  ;;  %s890_s7 = scalar_lea.hbm %s1278_s5, 4096 }
 0x32f   : > { %p887_p4 = scmp.ne.s32.totalorder %s1223_s26, %s886_s15  ;;  %p891_p9 = scmp.lt.u32.totalorder %s1223_s26, %s1278_s5 }
 0x330   : > { %p892_p1 = scmp.lt.u32.totalorder %s890_s7, %s886_s15  ;;  %p894_p6 = scmp.lt.u32.totalorder %s886_s15, %s1223_s26 }
 0x331   : > { %p888_p5 = pnand %p887_p4, %p1285_p11 }
 0x332   : > { %p893_p3 = por %p892_p1, %p891_p9 }
 0x333   : > { %p889_p7 = pneg %p888_p5 }
 0x334   : > { %p895_p12 = por %p894_p6, %p893_p3 }
 0x336   : > { %p896_p13 = pnand %p895_p12, %p889_p7 }
 0x338   : > { %899 = shalt.err (!%p896_p13)
}
 0x339   : > { %s947_s25 = smov 256   ;;  %s948_s13 = smov 16  }
 0x33a   : > { %787 = dma.vmem_to_hbm [thread:$0]  (%p1285_p11), %s1225_s11, 2048, %s1223_s26, %s609_s22, %s947_s25, %s947_s25, %s948_s13  }
 0x33b PF: > { %s637_s17 = sand.u32 1, %s926_s18   ;;  %p1286_p8 = scmp.ne.s32.totalorder %s1283_s6, 0 }
 0x33c   : > { %p1287_p10 = scmp.ge.s32.totalorder %s938_s21, 2  ;;  %s638_s28 = scalar_lea.sflag [#allocation4], %s637_s17 }
 0x33e   : > { %p794_p0 = pnand %p1287_p10, %p1286_p8 }
 0x340   : > { %921 = dma.done.wait (!%p794_p0), %s638_s28, 2048  }
 0x341   : > { %923 = vsyncadd (!%p794_p0), %s638_s28, 4294965248  ;;  %p18_p2 = scmp.ge.s32.totalorder %s1004_s24, 4   ;;  %s1288_s18 = smov %s930_s19 }
 0x342   : > { %s1289_s19 = smov %s934_s20  ;;  %s1290_s20 = smov %s1016_s27 }
 0x343   : > { %s1291_s21 = smov %s1004_s24  ;;  %20 = sbr.rel (!%p18_p2) target bundleno = 5 (0x5), region = 87 }
 0x34a   :  { %643 = vsyncpa [#allocation3], 1 }
 0x34b   :  { %645 = vsyncpa [#allocation3 + $0x1], 1 }
 0x34c   :  { %646 = vsyncpa [#allocation4], 1 }
 0x34d   :  { %648 = vsyncpa [#allocation4 + $0x1], 1 }

</bundles_post_ra>
